<compile_context>
chip_gen: v5e
topology: v5e:2x2
jax: 0.10.0
libtpu: 0.0.40
codegen_flags: <defaults>
</compile_context>

<pallas_src>
import jax
import jax.numpy as jnp
from jax import lax
from jax.experimental import pallas as pl
from jax.experimental.pallas import tpu as pltpu


# ------------------------------------------------------------- helpers ------
def _round_up(x, m):
    return ((x + m - 1) // m) * m


def _clamp(v, lo, hi):
    return int(min(max(v, lo), hi))


def bilinear_matrix(out_size, in_size):
    """Row-stochastic [out_size, in_size] matrix reproducing
    F.interpolate(mode='bilinear', align_corners=False) along one axis."""
    scale = in_size / out_size
    i = jnp.arange(out_size, dtype=jnp.float32)
    src = (i + 0.5) * scale - 0.5
    src = jnp.maximum(src, 0.0)                      # PyTorch clamps negatives
    i0 = jnp.minimum(jnp.floor(src).astype(jnp.int32), in_size - 1)
    i1 = jnp.minimum(i0 + 1, in_size - 1)
    w1 = src - i0.astype(jnp.float32)
    w0 = 1.0 - w1
    rows = jnp.arange(out_size)
    m = jnp.zeros((out_size, in_size), jnp.float32)
    m = m.at[rows, i0].add(w0)
    m = m.at[rows, i1].add(w1)
    return m


def im2col_3x3_s2_p1_cfirst(x):
    """x: [N, C, H, W] -> [N, C*9, Ho*Wo]; rows are (C, kh, kw)-major,
    columns are the flattened output spatial positions."""
    n, c, h, w = x.shape
    ho, wo = h // 2, w // 2
    xp = jnp.pad(x, ((0, 0), (0, 0), (1, 1), (1, 1)))
    taps = []
    for kh in range(3):
        for kw in range(3):
            taps.append(xp[:, :, kh:kh + 2 * ho:2, kw:kw + 2 * wo:2])
    p = jnp.stack(taps, axis=2)                      # [N, C, 9, Ho, Wo]
    return p.reshape(n, c * 9, ho * wo)              # [N, K, P]


def _pick_th(h, ho, wo, w, nc, budget=20 << 20):
    """Output-H tile for kernel B: as large as a ~20 MiB block budget allows
    (keeps double-buffered blocks well inside v7x's scoped VMEM) while being a
    multiple of 8 sublanes."""
    fixed = 2 * (nc * ho * wo * 2) + 2 * (wo * w * 2) + nc * ho * w * 2
    per_row = 2 * (ho * 2) + 2 * (nc * w * 2) + w * 4
    th = (budget - fixed) // per_row
    if th >= h:
        return h
    th = max(8, (int(th) // 8) * 8)
    return min(th, h)


# ------------------------------------------------------------- kernel A -----
def backbone_classifier_kernel(p_ref, wbb_ref, bbb_ref, wcls_ref, bcls_ref,
                               o_ref):
    """3x3/s2 conv (as matmul over im2col) + bias + ReLU + 1x1 classifier.

    p_ref   : (1, Kp, TP)  bf16  im2col patches (K zero-padded to Kp)
    wbb_ref : (Chid, Kp)   bf16  backbone conv weight (zero-padded)
    bbb_ref : (Chid, 1)    f32   backbone bias (broadcasts over lanes)
    wcls_ref: (NC, Chid)   bf16  classifier 1x1-conv weight
    bcls_ref: (NC, 1)      f32   classifier bias
    o_ref   : (1, NC, TP)  bf16  logits at the low (Ho, Wo) resolution
    """
    feat = jnp.dot(wbb_ref[...], p_ref[0],
                   preferred_element_type=jnp.float32)
    feat = jnp.maximum(feat + bbb_ref[...], 0.0)     # bias + ReLU in f32
    logits = jnp.dot(wcls_ref[...], feat.astype(jnp.bfloat16),
                     preferred_element_type=jnp.float32) + bcls_ref[...]
    o_ref[0] = logits.astype(o_ref.dtype)


# ------------------------------------------------------------- kernel B -----
def bilinear_upsample_kernel(lg_ref, wwt_ref, wh_ref, o_ref):
    """Separable bilinear upsample (align_corners=False) for all NC classes of
    one image, one tile of output rows.

    lg_ref : (1, NC, Ho, Wo)  bf16   low-res logits
    wwt_ref: (Wo, W)          bf16   bilinear_matrix(W, Wo).T
    wh_ref : (TH, Ho)         bf16   rows [h*TH, h*TH+TH) of bilinear_matrix(H, Ho)
    o_ref  : (1, NC, TH, W)   bf16   final logits tile, lane dim = W
    """
    nc = lg_ref.shape[1]
    ho = lg_ref.shape[2]
    wo = lg_ref.shape[3]
    # W-direction for all classes in one dot; bf16 result straight off the MXU
    # (no f32 temp buffer).  Reshape only collapses leading dims (minor dim
    # untouched) -> cheap/safe relayout.
    lg = lg_ref[0].reshape(nc * ho, wo)
    t = jnp.dot(lg, wwt_ref[...], preferred_element_type=jnp.bfloat16)  # (NC*Ho, W)
    wh = wh_ref[...]
    for c in range(nc):                                 # static unroll, NC small
        t_c = t[c * ho:(c + 1) * ho, :]                 # static slice
        o_ref[0, c] = jnp.dot(wh, t_c,
                              preferred_element_type=jnp.float32
                              ).astype(o_ref.dtype)


# ------------------------------------------------------------- wrapper ------
def simple_segmentation_forward(x, w_bb, b_bb, w_cls, b_cls, *,
                                out_dtype=jnp.bfloat16):
    """x: [N, Cin, H, W] (NCHW) -> {'out': [N, NC, H, W]} (NCHW, out_dtype)."""
    n, cin, h, w = x.shape
    assert h % 2 == 0 and w % 2 == 0, "stride-2 backbone assumes even H, W"
    chid = w_bb.shape[0]
    nc = w_cls.shape[0]
    ho, wo = h // 2, w // 2
    p_len = ho * wo
    k = cin * 9
    kp = _round_up(k, 16)                 # bf16 sublane packing (NOT 128)

    # Large, lane-dense spatial tile; pad P so the grid divides evenly.
    tile_p = min(8192, _round_up(p_len, 128))
    pp = _round_up(p_len, tile_p)
    grid_a = (n, pp // tile_p)

    # --- host-side prep (bf16 feeds, f32 biases) -----------------------------
    patches = im2col_3x3_s2_p1_cfirst(x).astype(jnp.bfloat16)   # [N, K, P]
    patches = jnp.pad(patches, ((0, 0), (0, kp - k), (0, pp - p_len)))
    wbb_t = jnp.pad(w_bb.reshape(chid, k).astype(jnp.bfloat16),
                    ((0, 0), (0, kp - k)))                      # [Chid, Kp]
    wcls_t = w_cls.reshape(nc, chid).astype(jnp.bfloat16)       # [NC, Chid]
    bbb = b_bb.reshape(chid, 1).astype(jnp.float32)
    bcls = b_cls.reshape(nc, 1).astype(jnp.float32)

    # VMEM: double-buffered input/output blocks + resident weights + headroom.
    vmem_a = _clamp(
        2 * (kp * tile_p * 2) + 2 * (nc * tile_p * 2)
        + 2 * (chid * kp + nc * chid) * 2 + (chid + nc) * 8 + (8 << 20),
        16 << 20, 48 << 20)

    # --- kernel A: conv + ReLU + classifier, tiled over spatial --------------
    logits = pl.pallas_call(
        backbone_classifier_kernel,
        out_shape=jax.ShapeDtypeStruct((n, nc, pp), jnp.bfloat16),
        grid=grid_a,
        in_specs=[
            pl.BlockSpec((1, kp, tile_p), lambda b, p: (b, 0, p)),
            pl.BlockSpec((chid, kp), lambda b, p: (0, 0)),
            pl.BlockSpec((chid, 1), lambda b, p: (0, 0)),
            pl.BlockSpec((nc, chid), lambda b, p: (0, 0)),
            pl.BlockSpec((nc, 1), lambda b, p: (0, 0)),
        ],
        out_specs=pl.BlockSpec((1, nc, tile_p), lambda b, p: (b, 0, p)),
        compiler_params=pltpu.CompilerParams(
            dimension_semantics=("parallel", "parallel"),
            vmem_limit_bytes=vmem_a),
    )(patches, wbb_t, bbb, wcls_t, bcls)

    # Drop the spatial padding (identity when p_len is 128-aligned) and view
    # as (N, NC, Ho, Wo) for the upsample.
    logits = logits[:, :, :p_len].reshape(n, nc, ho, wo)

    # --- kernel B: separable bilinear upsample, all classes per step ---------
    wh = bilinear_matrix(h, ho).astype(jnp.bfloat16)      # [H, Ho]
    wwt = bilinear_matrix(w, wo).T.astype(jnp.bfloat16)   # [Wo, W]

    th = _pick_th(h, ho, wo, w, nc)
    grid_b = (n, pl.cdiv(h, th))
    osz = jnp.dtype(out_dtype).itemsize
    vmem_b = _clamp(
        2 * (nc * ho * wo * 2) + 2 * (wo * w * 2) + 2 * (th * ho * 2)
        + 2 * (nc * th * w * osz) + nc * ho * w * 2 + th * w * 4 + (8 << 20),
        16 << 20, 48 << 20)

    out = pl.pallas_call(
        bilinear_upsample_kernel,
        out_shape=jax.ShapeDtypeStruct((n, nc, h, w), out_dtype),
        grid=grid_b,
        in_specs=[
            pl.BlockSpec((1, nc, ho, wo), lambda b, hh: (b, 0, 0, 0)),
            pl.BlockSpec((wo, w), lambda b, hh: (0, 0)),
            pl.BlockSpec((th, ho), lambda b, hh: (hh, 0)),
        ],
        out_specs=pl.BlockSpec((1, nc, th, w), lambda b, hh: (b, 0, hh, 0)),
        compiler_params=pltpu.CompilerParams(
            dimension_semantics=("parallel", "parallel"),
            vmem_limit_bytes=vmem_b),
    )(logits, wwt, wh)

    return {"out": out}     # already NCHW, no transpose needed


# ---------------------------------------------------------------- reference --
def reference_forward(x, w_bb, b_bb, w_cls, b_cls):
    n, cin, h, w = x.shape
    feat = lax.conv_general_dilated(
        x, w_bb, window_strides=(2, 2), padding=((1, 1), (1, 1)),
        dimension_numbers=("NCHW", "OIHW", "NCHW"))
    feat = jnp.maximum(feat + b_bb[None, :, None, None], 0.0)
    logits = lax.conv_general_dilated(
        feat, w_cls, window_strides=(1, 1), padding="VALID",
        dimension_numbers=("NCHW", "OIHW", "NCHW"))
    logits = logits + b_cls[None, :, None, None]
    wh = bilinear_matrix(h, h // 2)
    ww = bilinear_matrix(w, w // 2)
    return jnp.einsum("ah,nchw,bw->ncab", wh, logits, ww)


# --------------------------------------------------------------------- main --
if __name__ == "__main__":
    N, CIN, H, W = 2, 4, 16, 16
    CHID, NC = 32, 6

    key = jax.random.PRNGKey(0)
    k0, k1, k2, k3, k4 = jax.random.split(key, 5)
    x = jax.random.normal(k0, (N, CIN, H, W), jnp.float32)
    w_bb = jax.random.normal(k1, (CHID, CIN, 3, 3), jnp.float32) * 0.1
    b_bb = jax.random.normal(k2, (CHID,), jnp.float32) * 0.1
    w_cls = jax.random.normal(k3, (NC, CHID, 1, 1), jnp.float32) * 0.1
    b_cls = jax.random.normal(k4, (NC,), jnp.float32) * 0.1

    result = simple_segmentation_forward(x, w_bb, b_bb, w_cls, b_cls)
    out = jax.block_until_ready(result["out"])
    assert out.shape == (N, NC, H, W), out.shape

    ref = jax.block_until_ready(reference_forward(x, w_bb, b_bb, w_cls, b_cls))
    out_f32 = out.astype(jnp.float32)
    max_err = float(jnp.max(jnp.abs(out_f32 - ref)))
    # bf16 feeds/weights/intermediates and bf16 final output (f32 accumulation
    # everywhere) -> tolerance relaxed vs pure-f32.
    assert jnp.allclose(out_f32, ref, atol=4e-2, rtol=4e-2), max_err

    print("KERNEL_OK")
</pallas_src>

<mosaic_0001>
module attributes {stable_mosaic.version = 11 : i64} {
  func.func @backbone_classifier_kernel(%arg0: i32, %arg1: i32, %arg2: memref<1x48x128xbf16, #tpu.memory_space<vmem>>, %arg3: memref<32x48xbf16, #tpu.memory_space<vmem>>, %arg4: memref<32x1xf32, #tpu.memory_space<vmem>>, %arg5: memref<6x32xbf16, #tpu.memory_space<vmem>>, %arg6: memref<6x1xf32, #tpu.memory_space<vmem>>, %arg7: memref<1x6x128xbf16, #tpu.memory_space<vmem>>) attributes {dimension_semantics = [#tpu.dimension_semantics<parallel>, #tpu.dimension_semantics<parallel>], iteration_bounds = array<i64: 2, 1>, scalar_prefetch = 0 : i64, scratch_operands = 0 : i64, tpu.core_type = #tpu.core_type<tc>, window_params = [{transform_indices = @transform_0, window_bounds = array<i64: 1, 48, 128>}, {pipeline_mode = #tpu.pipeline_mode<synchronous>, transform_indices = @transform_1, window_bounds = array<i64: 32, 48>}, {pipeline_mode = #tpu.pipeline_mode<synchronous>, transform_indices = @transform_2, window_bounds = array<i64: 32, 1>}, {pipeline_mode = #tpu.pipeline_mode<synchronous>, transform_indices = @transform_3, window_bounds = array<i64: 6, 32>}, {pipeline_mode = #tpu.pipeline_mode<synchronous>, transform_indices = @transform_4, window_bounds = array<i64: 6, 1>}, {transform_indices = @transform_5, window_bounds = array<i64: 1, 6, 128>}]} {
    %c0 = arith.constant 0 : index
    %c0_0 = arith.constant 0 : index
    %0 = vector.load %arg3[%c0, %c0_0] : memref<32x48xbf16, #tpu.memory_space<vmem>>, vector<32x48xbf16>
    %c0_1 = arith.constant 0 : index
    %c0_2 = arith.constant 0 : index
    %c0_3 = arith.constant 0 : index
    %1 = vector.load %arg2[%c0_1, %c0_2, %c0_3] : memref<1x48x128xbf16, #tpu.memory_space<vmem>>, vector<1x48x128xbf16>
    %2 = vector.shape_cast %1 : vector<1x48x128xbf16> to vector<48x128xbf16>
    %cst = arith.constant dense<0.000000e+00> : vector<32x128xf32>
    %3 = tpu.matmul %0, %2, %cst {dimension_numbers = #tpu.dot_dimension_numbers<[1], [0], [0], [1], [0, 0, 1, 1], [], []>} : vector<32x48xbf16>, vector<48x128xbf16>, vector<32x128xf32> -> vector<32x128xf32>
    %c0_4 = arith.constant 0 : index
    %c0_5 = arith.constant 0 : index
    %4 = vector.load %arg4[%c0_4, %c0_5] : memref<32x1xf32, #tpu.memory_space<vmem>>, vector<32x1xf32>
    %5 = vector.broadcast %4 : vector<32x1xf32> to vector<32x128xf32>
    %6 = arith.addf %3, %5 : vector<32x128xf32>
    %cst_6 = arith.constant 0.000000e+00 : f32
    %7 = vector.broadcast %cst_6 : f32 to vector<32x128xf32>
    %8 = arith.maximumf %6, %7 : vector<32x128xf32>
    %c0_7 = arith.constant 0 : index
    %c0_8 = arith.constant 0 : index
    %9 = vector.load %arg5[%c0_7, %c0_8] : memref<6x32xbf16, #tpu.memory_space<vmem>>, vector<6x32xbf16>
    %10 = arith.truncf %8 : vector<32x128xf32> to vector<32x128xbf16>
    %cst_9 = arith.constant dense<0.000000e+00> : vector<6x128xf32>
    %11 = tpu.matmul %9, %10, %cst_9 {dimension_numbers = #tpu.dot_dimension_numbers<[1], [0], [0], [1], [0, 0, 1, 1], [], []>} : vector<6x32xbf16>, vector<32x128xbf16>, vector<6x128xf32> -> vector<6x128xf32>
    %c0_10 = arith.constant 0 : index
    %c0_11 = arith.constant 0 : index
    %12 = vector.load %arg6[%c0_10, %c0_11] : memref<6x1xf32, #tpu.memory_space<vmem>>, vector<6x1xf32>
    %13 = vector.broadcast %12 : vector<6x1xf32> to vector<6x128xf32>
    %14 = arith.addf %11, %13 : vector<6x128xf32>
    %15 = arith.truncf %14 : vector<6x128xf32> to vector<6x128xbf16>
    %c0_12 = arith.constant 0 : index
    %c0_13 = arith.constant 0 : index
    %c0_14 = arith.constant 0 : index
    %16 = vector.load %arg7[%c0_12, %c0_13, %c0_14] : memref<1x6x128xbf16, #tpu.memory_space<vmem>>, vector<1x6x128xbf16>
    %17 = vector.shape_cast %16 : vector<1x6x128xbf16> to vector<6x128xbf16>
    %18 = vector.shape_cast %15 : vector<6x128xbf16> to vector<1x6x128xbf16>
    tpu.vector_store %arg7[%c0_12, %c0_13, %c0_14], %18 {strides = array<i32>} : memref<1x6x128xbf16, #tpu.memory_space<vmem>>, vector<1x6x128xbf16>,
    return
  }
  func.func @transform_0(%arg0: i32, %arg1: i32) -> (i32, i32, i32) {
    %c0_i32 = arith.constant 0 : i32
    %c0_i32_0 = arith.constant 0 : i32
    return %arg0, %c0_i32, %arg1 : i32, i32, i32
  }
  func.func @transform_1(%arg0: i32, %arg1: i32) -> (i32, i32) {
    %c0_i32 = arith.constant 0 : i32
    %c0_i32_0 = arith.constant 0 : i32
    %c0_i32_1 = arith.constant 0 : i32
    return %c0_i32, %c0_i32_0 : i32, i32
  }
  func.func @transform_2(%arg0: i32, %arg1: i32) -> (i32, i32) {
    %c0_i32 = arith.constant 0 : i32
    %c0_i32_0 = arith.constant 0 : i32
    %c0_i32_1 = arith.constant 0 : i32
    return %c0_i32, %c0_i32_0 : i32, i32
  }
  func.func @transform_3(%arg0: i32, %arg1: i32) -> (i32, i32) {
    %c0_i32 = arith.constant 0 : i32
    %c0_i32_0 = arith.constant 0 : i32
    %c0_i32_1 = arith.constant 0 : i32
    return %c0_i32, %c0_i32_0 : i32, i32
  }
  func.func @transform_4(%arg0: i32, %arg1: i32) -> (i32, i32) {
    %c0_i32 = arith.constant 0 : i32
    %c0_i32_0 = arith.constant 0 : i32
    %c0_i32_1 = arith.constant 0 : i32
    return %c0_i32, %c0_i32_0 : i32, i32
  }
  func.func @transform_5(%arg0: i32, %arg1: i32) -> (i32, i32, i32) {
    %c0_i32 = arith.constant 0 : i32
    %c0_i32_0 = arith.constant 0 : i32
    return %arg0, %c0_i32, %arg1 : i32, i32, i32
  }
}

</mosaic_0001>

<bundles_post_ra>
// kernel: tpu_custom_call.1
= control target key start
LH: loop header
LB: loop body
LE: loop exit
PB: predicated region body
PF: predicated region fallthrough
CT: control target
= control target key end

     0   :  { %10 = vsyncpa [#allocation3], 0  ;;  %s799_s0 = inlined_call_operand.hbm [shape: bf16[2,48,128], index: 0, kind: input, shape index: {}]   ;;  %s800_s1 = inlined_call_operand.vmem [shape: bf16[32,48], index: 1, kind: input, shape index: {}]   ;;  %s801_s2 = inlined_call_operand.vmem [shape: f32[32,1], index: 2, kind: input, shape index: {}]   ;;  %s802_s3 = inlined_call_operand.vmem [shape: bf16[6,32], index: 3, kind: input, shape index: {}]   ;;  %s803_s4 = inlined_call_operand.vmem [shape: f32[6,1], index: 4, kind: input, shape index: {}]   ;;  %s804_s5 = inlined_call_operand.vmem [shape: bf16[2,6,128], index: 5, kind: output, shape index: {}]  }
   0x1   :  { %12 = vsyncpa [#allocation3 + $0x1], 0  ;;  %s693_s18 = smov 0   ;;  %s695_s19 = smov 0  }
   0x2   :  { %s697_s20 = smov 0   ;;  %s699_s21 = smov 0  }
   0x3   :  { %s701_s22 = smov 0   ;;  %s703_s23 = smov 0  }
   0x4 LB: > { %s474_s24 = sadd.s32 4294967295, %s658_s23   ;;  %s30_s25 = sadd.s32 1, %s654_s22  ;;  %s658_s23 = sphi %s703_s23, %s18_s23   ;;  %s654_s22 = sphi %s701_s22, %s810_s22   ;;  %s650_s21 = sphi %s699_s21, %s809_s21   ;;  %s646_s20 = sphi %s697_s20, %s808_s20   ;;  %s642_s19 = sphi %s695_s19, %s807_s19   ;;  %s638_s18 = sphi %s693_s18, %s806_s18  }
   0x5   : > { %p32_p0 = scmp.ge.s32.totalorder %s30_s25, 2  ;;  %s39_s26 = sadd.s32 1, %s646_s20 }
   0x6   : > { %p46_p1 = scmp.ne.s32.totalorder %s646_s20, %s642_s19  ;;  %p47_p2 = scmp.eq.s32.totalorder %s658_s23, 0 }
   0x7   : > { %s812_s25 = smov (%p32_p0, %s30_s25), 0  ;;  %p52_p4 = scmp.ne.s32.totalorder %s642_s19, %s638_s18 }
   0x8   : > { %p48_p3 = por %p47_p2, %p46_p1  ;;  %s34_s27 = ssub.s32 %s654_s22, %s812_s25 }
   0x9   : > { %p53_p5 = scmp.eq.s32.totalorder %s474_s24, 0  ;;  %p37_p6 = scmp.eq.s32.totalorder %s34_s27, 0 }
   0xa   : > { %p523_p8 = scmp.lt.s32.totalorder %s658_s23, 2  ;;  %s200_s30 = sand.u32 1, %s646_s20  }
   0xb   : > { %p732_p7 = por %p53_p5, %p52_p4  ;;  %s515_s6 = smul.u32 24, %s654_s22 }
   0xc   : > { %s738_s29 = scalar_select %p37_p6, %s646_s20, %s39_s26  }
   0xd   : > { %s514_s7 = smul.u32 24, %s200_s30  ;;  %s210_s10 = scalar_lea.hbm %s799_s0, %s515_s6 }
   0xe   : > { %p520_p9 = pnand %p523_p8, %p48_p3  ;;  %s211_s11 = sshll.u32 %s210_s10, 4  ;;  %s212_s11 = int_to_ptr.hbm [resolvable:$true] %s211_s11 }
   0xf   : > { %s204_s12 = scalar_lea.vmem [#allocation2], %s514_s7  ;;  %s201_s14 = scalar_lea.sflag [#allocation3], %s200_s30 }
  0x10   : > { %s213_s13 = sshll.u32 %s204_s12, 4  ;;  %s660_s15 = smov 64   ;;  %s214_s13 = int_to_ptr.vmem [resolvable:$true] %s213_s13 }
  0x11   : > { %s661_s16 = smov 4   ;;  %p479_p10 = scmp.ge.s32.totalorder %s658_s23, 1 }
  0x12   : > { %522 = dma.hbm_to_vmem [thread:$0]  (!%p520_p9), %s212_s11, 384, %s214_s13, %s201_s14, %s660_s15, %s660_s15, %s661_s16  }
  0x13   : > { %p221_p11 = scmp.lt.s32.totalorder %s658_s23, 3 }
  0x15   : > { %p222_p12 = pnand %p479_p10, %p221_p11 }
  0x16   : > { %s227_s17 = sand.u32 (!%p222_p12), 1, %s642_s19  }
  0x17   : > { %225 = sbr.rel (%p222_p12) target bundleno = 329 (0x149), region = 40  ;;  %s228_s24 = scalar_lea.sflag (!%p222_p12), [#allocation3], %s227_s17 }
  0x18   : > { %s516_s18 = smul.u32 (!%p222_p12), 24, %s227_s17 }
  0x1a   : > { %s231_s26 = scalar_lea.vmem (!%p222_p12), [#allocation2], %s516_s18 }
  0x1c   : > { %633 = dma.done.wait (%p732_p7), %s228_s24, 384  }
  0x1d   : > { %635 = vsyncadd (%p732_p7), %s228_s24, 4294966912  ;;  %v662_v0 = vmov 0   ;;  %v510_v1 = vld [vmem:[%s231_s26 + $0x10] sm:$0xff]  ;;  %v509_v3 = vld [vmem:[%s231_s26 + $0x8] sm:$0xff]  ;;  %vm331_vm0 = vcmask 392192   ;;  %vm370_vm1 = vcmask 261120  }
  0x1e   : > { %575 = vset.pattern.permute.xlu0 %v662_v0  ;;  %576 = vset.pattern.permute.xlu1 %v662_v0  ;;  %v281_v2 = vld [vmem:[%s801_s2 + $0x10] sm:$0xff]  ;;  %v279_v4 = vld [vmem:[%s801_s2] sm:$0xff]  ;;  %v282_v6 = vld [vmem:[%s801_s2 + $0x18] sm:$0xff]  ;;  %p261_p13 = scmp.lt.s32.totalorder %s650_s21, 1 }
  0x1f   : > { %577 = vset.pattern.permute.xlu2 %v662_v0  ;;  %511 = vmatpush.bf16.msra.mxu2 %v510_v1  ;;  %v508_v5 = vld [vmem:[%s231_s26] sm:$0xff]  ;;  %v280_v7 = vld [vmem:[%s801_s2 + $0x8] sm:$0xff] }
  0x20   : > { %343 = vmatpush.bf16.msra.mxu0 %v510_v1  ;;  %295 = vperm.xlu0 %575, %v281_v2   ;;  %v507_v8 = vld [vmem:[%s800_s1 + $0x8] sm:$0xff]  ;;  %v506_v9 = vld [vmem:[%s800_s1] sm:$0xff]  ;;  %s814_s21 = smov (!%p261_p13, %s650_s21), 1 }
  0x21   : > { %285 = vperm.xlu1 %576, %v279_v4   ;;  %v364_v10 = vld [vmem:[%s803_s4] sm:$0x3f]  ;;  %s480_s24 = sshll.u32 %s814_s21, 2 }
  0x22   : > { %367 = vperm.xlu2 %577, %v364_v10   ;;  %v361_v29 = vld [vmem:[%s802_s3] sm:$0x7]  ;;  %s267_s30 = scalar_lea.vmem %s804_s5, %s480_s24 }
  0x23   : > { %512 = vmatpush.bf16.msra.mxu2 %v509_v3 }
  0x24   : > { %344 = vmatpush.bf16.msra.mxu0 %v509_v3 }
  0x27   : > { %513 = vmatpush.bf16.msra.mxu2 %v508_v5 }
  0x28   : > { %345 = vmatpush.bf16.msra.mxu0 %v508_v5  ;;  %300 = vperm.xlu0 %575, %v282_v6  }
  0x29   : > { %290 = vperm.xlu1 %576, %v280_v7  }
  0x2a   : > { %502 = vmatmul.msk.bf16.vlgmr.msra.gmra.mxu2 %vm331_vm0, %v507_v8 }
  0x2b   : > { %501 = vmatmul.msk.bf16.vlgmr.msra.gmra.mxu0 %vm331_vm0, %v506_v9 }
  0x7c   : > { %v368_v30 = vpop.permute.xlu2 %367 }
  0x92   : > { %v296_v13 = vpop.permute.xlu0 %295 }
  0x93   : > { %v286_v11 = vpop.permute.xlu1 %285 }
  0x9a   : > { %v301_v18 = vpop.permute.xlu0 %300 }
  0x9b   : > { %v291_v15 = vpop.permute.xlu1 %290 }
  0xa8   : > { %v347_v12 = vpop.f32.mrf.mxu0 }
  0xa9   : > { %v348_v20 = vadd.f32 %v347_v12, %v286_v11 }
  0xab   : > { %v357_v25 = vmax.f32 %v348_v20, 0.0 }
  0xad   : > { %v352_v14 = vpop.f32.mrf.mxu2 }
  0xae   : > { %v353_v17 = vadd.f32 %v352_v14, %v296_v13 }
  0xb0   : > { %v349_v16 = vpop.f32.mrf.mxu0  ;;  %v359_v23 = vmax.f32 %v353_v17, 0.0 }
  0xb1   : > { %v350_v21 = vadd.f32 %v349_v16, %v291_v15 }
  0xb3   : > { %v358_v26 = vmax.f32 %v350_v21, 0.0 }
  0xb5   : > { %v354_v19 = vpop.f32.mrf.mxu2  ;;  %v362_v28 = vpack.c.bf16 %v358_v26, %v357_v25 }
  0xb6   : > { %v355_v22 = vadd.f32 %v354_v19, %v301_v18 }
  0xb8   : > { %v360_v24 = vmax.f32 %v355_v22, 0.0 }
  0xba   : > { %v363_v27 = vpack.c.bf16 %v360_v24, %v359_v23 }
  0xbc   : > { %380 = vmatpush.bf16.msra.mxu1 %v363_v27 }
  0xc0   : > { %381 = vmatpush.bf16.msra.mxu1 %v362_v28 }
  0xc3   : > { %503 = vmatmul.msk.bf16.vlgmr.msra.gmra.mxu1 %vm370_vm1, %v361_v29 }
 0x140   : > { %v383_v31 = vpop.f32.mrf.mxu1 }
 0x141   : > { %v384_v32 = vadd.f32 %v383_v31, %v368_v30 }
 0x143   : > { %v387_v33 = vpack.c.bf16 %v384_v32, %v384_v32 }
 0x145   : > { %388 = vst [vmem:[%s267_s30] sm:$0x7] %v387_v33 }
 0x148   : > { %v385_v34 = vpop.f32.mrf.mxu1 }
 0x149 PF: > { %s18_s23 = sadd.s32 1, %s658_s23   ;;  %s806_s18 = smov %s642_s19 }
 0x14a   : > { %p15_p0 = scmp.ge.s32.totalorder %s18_s23, 4   ;;  %s807_s19 = smov %s646_s20 }
 0x14b   : > { %s808_s20 = smov %s738_s29  ;;  %s809_s21 = smov %s654_s22 }
 0x14c   : > { %s810_s22 = smov %s812_s25  ;;  %17 = sbr.rel (!%p15_p0) target bundleno = 4 (0x4), region = 80 }
 0x151   :  { %414 = vsyncpa [#allocation3], 1 }
 0x152   :  { %416 = vsyncpa [#allocation3 + $0x1], 1 }

</bundles_post_ra>
